<compile_context>
chip_gen: v7x
topology: tpu7x:2x2x1
jax: 0.10.0
libtpu: 0.0.40
codegen_flags: <defaults>
</compile_context>

<pallas_src>
import functools

import jax
import jax.numpy as jnp
from jax import lax
from jax.experimental import pallas as pl
from jax.experimental.pallas import tpu as pltpu


def _round_up(n, m):
    return (n + m - 1) // m * m


def _vmem_budget_bytes():
    """~80% of this chip's physical VMEM (64 MiB fallback is v7x-safe)."""
    try:
        cap = int(pltpu.get_tpu_info().vmem_capacity_bytes)
    except Exception:
        cap = 64 << 20
    return int(cap * 0.8)


def _pick_tile(total, cap, need, budget):
    """Largest multiple-of-128 divisor of `total` that is <= cap and fits budget.

    `total` must already be a multiple of 128, so 128 always works.
    """
    best = 128
    t = 128
    while t <= min(total, cap):
        if total % t == 0 and need(t) <= budget:
            best = t
        t += 128
    return best


# ----------------------------------------------------------------------------
# Pallas kernels
# ----------------------------------------------------------------------------
def _spectral_mul_kernel(xr_ref, xi_ref, wr_ref, wi_ref, or_ref, oi_ref):
    """Complex mode mixing: out[b,o,m] = sum_i x[b,i,m] * w[i,o,m] (complex).

    Naive complex MAC (8 VALU ops / element / input channel).  Only the
    (Co, TM) accumulators are live across the reduction; the reduction runs
    as a fori_loop over aligned 8-channel blocks (plus a static tail) so code
    size and live ranges stay bounded at realistic widths.
    """
    ci = wr_ref.shape[0]
    co, tm = or_ref.shape[1], or_ref.shape[2]

    def mac(re, im, xr_i, xi_i, wr_i, wi_i):
        re = re + (xr_i * wr_i - xi_i * wi_i)
        im = im + (xr_i * wi_i + xi_i * wr_i)
        return re, im

    re = jnp.zeros((co, tm), jnp.float32)
    im = jnp.zeros((co, tm), jnp.float32)

    nblk, rem = divmod(ci, 8)
    if nblk >= 2:
        def body(k, carry):
            re_c, im_c = carry
            c0 = pl.multiple_of(k * 8, 8)
            xr_b = xr_ref[0, pl.ds(c0, 8), :]      # (8, TM) aligned sublane slice
            xi_b = xi_ref[0, pl.ds(c0, 8), :]
            for r in range(8):
                wr_i = wr_ref[k * 8 + r]           # (Co, TM), dynamic major-dim index
                wi_i = wi_ref[k * 8 + r]
                re_c, im_c = mac(re_c, im_c,
                                 xr_b[r:r + 1, :], xi_b[r:r + 1, :], wr_i, wi_i)
            return re_c, im_c

        re, im = lax.fori_loop(0, nblk, body, (re, im))
        tail0 = nblk * 8
    else:
        tail0 = 0
        rem = ci

    for i in range(tail0, tail0 + rem):            # static tail / small-width path
        re, im = mac(re, im, xr_ref[:, i, :], xi_ref[:, i, :],
                     wr_ref[i, :, :], wi_ref[i, :, :])

    or_ref[0] = re
    oi_ref[0] = im


def _conv1x1_add_gelu_kernel(x_ref, x1_ref, w_ref, b_ref, o_ref):
    """out = GELU(W @ x + bias + x1) on a (Cout, TN) lane tile (1x1 conv == matmul)."""
    y = jnp.dot(w_ref[...], x_ref[0], preferred_element_type=jnp.float32)
    y = y + b_ref[...]                       # (Cout, 1) broadcast over lanes
    y = y + x1_ref[0]                        # spectral branch residual
    # exact (erf) GELU, matching PyTorch F.gelu default
    o_ref[0] = 0.5 * y * (1.0 + lax.erf(y * 0.7071067811865476))


# ----------------------------------------------------------------------------
# Wrappers
# ----------------------------------------------------------------------------
def spectral_conv2d(x, wr, wi, modes1, modes2):
    """SpectralConv2d forward.  FFTs in plain JAX, mode mixing in Pallas.

    wr, wi: pre-packed (Ci, Co, Mp) real/imag weights (Mp = M rounded to 128).
    """
    B, C, H, W = x.shape
    M = 2 * modes1 * modes2
    Mp = wr.shape[-1]

    # TODO(synk): no Pallas TPU FFT primitive; rfft2/irfft2 stay in jnp.fft.  A
    # further rework would replace the zero-padded spectrum + irfft2 with
    # truncated-DFT matmuls on the MXU.
    x_ft = jnp.fft.rfft2(x)                                   # (B,C,H,W//2+1) c64
    xa = x_ft[:, :, :modes1, :modes2]
    xb = x_ft[:, :, H - modes1:, :modes2]
    xm = jnp.concatenate([xa, xb], axis=2).reshape(B, C, M)   # (B, C, M)
    xr = jnp.real(xm).astype(jnp.float32)
    xi = jnp.imag(xm).astype(jnp.float32)
    if Mp != M:
        pad = ((0, 0), (0, 0), (0, Mp - M))
        xr = jnp.pad(xr, pad)
        xi = jnp.pad(xi, pad)

    budget = _vmem_budget_bytes()
    cp = _round_up(C, 8)
    # vreg bound: 2 * ceil(C/8) * (TM/128) accumulator vregs <= 32 (half the file)
    cap_vreg = 128 * max(1, 16 // max(1, (C + 7) // 8))

    def need(tm):
        # double-buffered wr/wi weight tiles + xr/xi input tiles + or/oi output tiles
        return 4 * tm * (2 * 2 * C * cp + 2 * 2 * cp + 2 * 2 * cp)

    TM = _pick_tile(Mp, cap_vreg, need, budget)
    num_m = Mp // TM

    # Grid (m-tiles, batch): batch is the fast axis so the weight blocks
    # (index map constant in b) stay resident across it and are DMA'd once per
    # m-tile.  Only the m axis is "parallel" so a v7x megacore splits the mode
    # tiles (each TC fetches only its weight slices), not the batch.
    or_, oi_ = pl.pallas_call(
        _spectral_mul_kernel,
        out_shape=(jax.ShapeDtypeStruct((B, C, Mp), jnp.float32),
                   jax.ShapeDtypeStruct((B, C, Mp), jnp.float32)),
        grid=(num_m, B),
        in_specs=[pl.BlockSpec((1, C, TM), lambda j, b: (b, 0, j)),
                  pl.BlockSpec((1, C, TM), lambda j, b: (b, 0, j)),
                  pl.BlockSpec((C, C, TM), lambda j, b: (0, 0, j)),
                  pl.BlockSpec((C, C, TM), lambda j, b: (0, 0, j))],
        out_specs=(pl.BlockSpec((1, C, TM), lambda j, b: (b, 0, j)),
                   pl.BlockSpec((1, C, TM), lambda j, b: (b, 0, j))),
        compiler_params=pltpu.CompilerParams(
            dimension_semantics=("parallel", "arbitrary"),
            vmem_limit_bytes=budget),
    )(xr, xi, wr, wi)

    out = (or_[:, :, :M] + 1j * oi_[:, :, :M]).astype(jnp.complex64)
    out = out.reshape(B, C, 2 * modes1, modes2)
    # Assemble the rfft2 spectrum with concatenate + pad (no scatter-into-zeros
    # .at[].set passes over full (B,C,H,W//2+1) arrays).
    mid = jnp.zeros((B, C, H - 2 * modes1, modes2), jnp.complex64)
    col = jnp.concatenate([out[:, :, :modes1], mid, out[:, :, modes1:]], axis=2)
    out_ft = jnp.pad(col, ((0, 0), (0, 0), (0, 0), (0, (W // 2 + 1) - modes2)))
    return jnp.fft.irfft2(out_ft, s=(H, W)).astype(jnp.float32)


def conv1x1_add_gelu(x, x1, w, b):
    """x2 = Conv2d(1x1)(x); return GELU(x1 + x2).  NCHW throughout (no transposes)."""
    B, C, H, W = x.shape
    HW = H * W
    xf = x.reshape(B, C, HW)           # free reshape, stays NCHW
    x1f = x1.reshape(B, C, HW)
    bias = b.reshape(C, 1)

    HWp = _round_up(HW, 128)           # lane-dense, pipelined tiles even for odd HW
    if HWp != HW:
        pad = ((0, 0), (0, 0), (0, HWp - HW))
        xf = jnp.pad(xf, pad)
        x1f = jnp.pad(x1f, pad)

    budget = _vmem_budget_bytes()
    cp = _round_up(C, 8)

    def need(tn):
        # x, x1, out tiles (double-buffered) + resident weight + bias
        return 4 * (3 * 2 * cp * tn + 2 * cp * _round_up(C, 128) + 2 * cp * 128)

    TN = _pick_tile(HWp, 1024, need, budget)   # 512-1024 lanes ~ HBM roofline

    out = pl.pallas_call(
        _conv1x1_add_gelu_kernel,
        out_shape=jax.ShapeDtypeStruct((B, C, HWp), jnp.float32),
        grid=(B, HWp // TN),
        in_specs=[pl.BlockSpec((1, C, TN), lambda b_, j: (b_, 0, j)),
                  pl.BlockSpec((1, C, TN), lambda b_, j: (b_, 0, j)),
                  pl.BlockSpec((C, C), lambda b_, j: (0, 0)),
                  pl.BlockSpec((C, 1), lambda b_, j: (0, 0))],
        out_specs=pl.BlockSpec((1, C, TN), lambda b_, j: (b_, 0, j)),
        compiler_params=pltpu.CompilerParams(
            dimension_semantics=("parallel", "parallel"),
            vmem_limit_bytes=budget),
    )(xf, x1f, w, bias)

    if HWp != HW:
        out = out[:, :, :HW]
    return out.reshape(B, C, H, W)


def basic_block(x, blk_params, modes1, modes2):
    # normalize=False, add_mlp=False path of BasicBlock.forward
    for j in range(3):
        wr, wi = blk_params["spectral"][j]
        x1 = spectral_conv2d(x, wr, wi, modes1, modes2)
        w, b = blk_params["pointwise"][j]
        x = conv1x1_add_gelu(x, x1, w, b)
    return x


def stacked_basic_block(x, params, modes1, modes2):
    for blk in params:
        x = basic_block(x, blk, modes1, modes2)
    return x


# ----------------------------------------------------------------------------
# Deterministic parameter init (synthetic; shapes follow the torch module)
# ----------------------------------------------------------------------------
def init_params(key, modes1, modes2, width, depth):
    params = []
    spec_scale = 1.0 / (width * width)          # SpectralConv2d scale
    conv_bound = 1.0 / (width ** 0.5)           # ~torch Conv2d 1x1 init range
    for _ in range(depth):
        spec, pw = [], []
        for _ in range(3):
            key, k1, k2, k3, k4, kw, kb = jax.random.split(key, 7)
            shp = (width, width, modes1, modes2)
            spec.append((
                spec_scale * jax.random.uniform(k1, shp, jnp.float32),
                spec_scale * jax.random.uniform(k2, shp, jnp.float32),
                spec_scale * jax.random.uniform(k3, shp, jnp.float32),
                spec_scale * jax.random.uniform(k4, shp, jnp.float32),
            ))
            pw.append((
                jax.random.uniform(kw, (width, width), jnp.float32,
                                   -conv_bound, conv_bound),
                jax.random.uniform(kb, (width,), jnp.float32,
                                   -conv_bound, conv_bound),
            ))
        params.append({"spectral": spec, "pointwise": pw})
    return params


def pack_params(raw_params, modes1, modes2):
    """One-time kernel-ready packing of the spectral weights.

    Concatenate the two mode corners, flatten to (Ci, Co, M) and zero-pad the
    mode axis to a multiple of 128 ONCE here, instead of re-materializing the
    concatenation on every forward call under jit.
    """
    M = 2 * modes1 * modes2
    Mp = _round_up(M, 128)
    packed = []
    for blk in raw_params:
        spec = []
        for (w1r, w1i, w2r, w2i) in blk["spectral"]:
            C = w1r.shape[0]
            wr = jnp.concatenate([w1r, w2r], axis=2).reshape(C, C, M)
            wi = jnp.concatenate([w1i, w2i], axis=2).reshape(C, C, M)
            if Mp != M:
                pad = ((0, 0), (0, 0), (0, Mp - M))
                wr = jnp.pad(wr, pad)
                wi = jnp.pad(wi, pad)
            spec.append((wr, wi))
        packed.append({"spectral": spec,
                       "pointwise": list(blk["pointwise"])})
    return packed


# ----------------------------------------------------------------------------
# Pure-JAX reference (mirrors the PyTorch forward) for a correctness check
# ----------------------------------------------------------------------------
def ref_forward(x, params, modes1, modes2):
    def gelu(y):
        return 0.5 * y * (1.0 + lax.erf(y / jnp.sqrt(2.0).astype(y.dtype)))

    def spectral_ref(x, w1r, w1i, w2r, w2i):
        B, C, H, W = x.shape
        x_ft = jnp.fft.rfft2(x)
        w1 = (w1r + 1j * w1i).astype(jnp.complex64)
        w2 = (w2r + 1j * w2i).astype(jnp.complex64)
        out_ft = jnp.zeros((B, C, H, W // 2 + 1), jnp.complex64)
        out_ft = out_ft.at[:, :, :modes1, :modes2].set(
            jnp.einsum("bixy,ioxy->boxy", x_ft[:, :, :modes1, :modes2], w1,
                       precision=lax.Precision.HIGHEST))
        out_ft = out_ft.at[:, :, H - modes1:, :modes2].set(
            jnp.einsum("bixy,ioxy->boxy", x_ft[:, :, H - modes1:, :modes2], w2,
                       precision=lax.Precision.HIGHEST))
        return jnp.fft.irfft2(out_ft, s=(H, W)).astype(jnp.float32)

    for blk in params:
        for j in range(3):
            x1 = spectral_ref(x, *blk["spectral"][j])
            w, b = blk["pointwise"][j]
            x2 = jnp.einsum("oi,bihw->bohw", w, x,
                            precision=lax.Precision.HIGHEST)
            x2 = x2 + b[None, :, None, None]
            x = gelu(x1 + x2)
    return x


# ----------------------------------------------------------------------------
if __name__ == "__main__":
    modes1, modes2 = 4, 4
    width = 8
    depth = 2
    B, H, W = 2, 16, 16

    key = jax.random.PRNGKey(0)
    key, kx = jax.random.split(key)
    x = jax.random.normal(kx, (B, width, H, W), jnp.float32)
    raw_params = init_params(key, modes1, modes2, width, depth)
    params = pack_params(raw_params, modes1, modes2)   # one-time weight packing

    fwd = jax.jit(functools.partial(stacked_basic_block,
                                    modes1=modes1, modes2=modes2))
    out = jax.block_until_ready(fwd(x, params))

    ref = ref_forward(x, raw_params, modes1, modes2)
    max_err = float(jnp.max(jnp.abs(out - ref)))
    assert out.shape == (B, width, H, W)
    assert max_err < 1e-3, f"mismatch vs reference: {max_err}"

    print("KERNEL_OK")
</pallas_src>

<mosaic_0001>
module attributes {stable_mosaic.version = 11 : i64} {
  func.func @_spectral_mul_kernel(%arg0: i32, %arg1: i32, %arg2: memref<1x8x128xf32, #tpu.memory_space<vmem>>, %arg3: memref<1x8x128xf32, #tpu.memory_space<vmem>>, %arg4: memref<8x8x128xf32, #tpu.memory_space<vmem>>, %arg5: memref<8x8x128xf32, #tpu.memory_space<vmem>>, %arg6: memref<1x8x128xf32, #tpu.memory_space<vmem>>, %arg7: memref<1x8x128xf32, #tpu.memory_space<vmem>>) attributes {dimension_semantics = [#tpu.dimension_semantics<parallel>, #tpu.dimension_semantics<arbitrary>], iteration_bounds = array<i64: 1, 2>, scalar_prefetch = 0 : i64, scratch_operands = 0 : i64, tpu.core_type = #tpu.core_type<tc>, window_params = [{transform_indices = @transform_0, window_bounds = array<i64: 1, 8, 128>}, {transform_indices = @transform_1, window_bounds = array<i64: 1, 8, 128>}, {transform_indices = @transform_2, window_bounds = array<i64: 8, 8, 128>}, {transform_indices = @transform_3, window_bounds = array<i64: 8, 8, 128>}, {transform_indices = @transform_4, window_bounds = array<i64: 1, 8, 128>}, {transform_indices = @transform_5, window_bounds = array<i64: 1, 8, 128>}]} {
    %cst = arith.constant 0.000000e+00 : f32
    %0 = vector.broadcast %cst : f32 to vector<8x128xf32>
    %cst_0 = arith.constant 0.000000e+00 : f32
    %1 = vector.broadcast %cst_0 : f32 to vector<8x128xf32>
    %c0 = arith.constant 0 : index
    %c0_1 = arith.constant 0 : index
    %c0_2 = arith.constant 0 : index
    %2 = vector.load %arg2[%c0, %c0_1, %c0_2] : memref<1x8x128xf32, #tpu.memory_space<vmem>>, vector<1x1x128xf32>
    %3 = vector.shape_cast %2 : vector<1x1x128xf32> to vector<1x128xf32>
    %c0_3 = arith.constant 0 : index
    %c0_4 = arith.constant 0 : index
    %c0_5 = arith.constant 0 : index
    %4 = vector.load %arg3[%c0_3, %c0_4, %c0_5] : memref<1x8x128xf32, #tpu.memory_space<vmem>>, vector<1x1x128xf32>
    %5 = vector.shape_cast %4 : vector<1x1x128xf32> to vector<1x128xf32>
    %c0_6 = arith.constant 0 : index
    %c0_7 = arith.constant 0 : index
    %c0_8 = arith.constant 0 : index
    %6 = vector.load %arg4[%c0_6, %c0_7, %c0_8] : memref<8x8x128xf32, #tpu.memory_space<vmem>>, vector<1x8x128xf32>
    %7 = vector.shape_cast %6 : vector<1x8x128xf32> to vector<8x128xf32>
    %c0_9 = arith.constant 0 : index
    %c0_10 = arith.constant 0 : index
    %c0_11 = arith.constant 0 : index
    %8 = vector.load %arg5[%c0_9, %c0_10, %c0_11] : memref<8x8x128xf32, #tpu.memory_space<vmem>>, vector<1x8x128xf32>
    %9 = vector.shape_cast %8 : vector<1x8x128xf32> to vector<8x128xf32>
    %10 = vector.broadcast %3 : vector<1x128xf32> to vector<8x128xf32>
    %11 = arith.mulf %10, %7 : vector<8x128xf32>
    %12 = vector.broadcast %5 : vector<1x128xf32> to vector<8x128xf32>
    %13 = arith.mulf %12, %9 : vector<8x128xf32>
    %14 = arith.subf %11, %13 : vector<8x128xf32>
    %15 = arith.addf %0, %14 : vector<8x128xf32>
    %16 = vector.broadcast %3 : vector<1x128xf32> to vector<8x128xf32>
    %17 = arith.mulf %16, %9 : vector<8x128xf32>
    %18 = vector.broadcast %5 : vector<1x128xf32> to vector<8x128xf32>
    %19 = arith.mulf %18, %7 : vector<8x128xf32>
    %20 = arith.addf %17, %19 : vector<8x128xf32>
    %21 = arith.addf %1, %20 : vector<8x128xf32>
    %c0_12 = arith.constant 0 : index
    %c1 = arith.constant 1 : index
    %c0_13 = arith.constant 0 : index
    %22 = vector.load %arg2[%c0_12, %c1, %c0_13] : memref<1x8x128xf32, #tpu.memory_space<vmem>>, vector<1x1x128xf32>
    %23 = vector.shape_cast %22 : vector<1x1x128xf32> to vector<1x128xf32>
    %c0_14 = arith.constant 0 : index
    %c1_15 = arith.constant 1 : index
    %c0_16 = arith.constant 0 : index
    %24 = vector.load %arg3[%c0_14, %c1_15, %c0_16] : memref<1x8x128xf32, #tpu.memory_space<vmem>>, vector<1x1x128xf32>
    %25 = vector.shape_cast %24 : vector<1x1x128xf32> to vector<1x128xf32>
    %c1_17 = arith.constant 1 : index
    %c0_18 = arith.constant 0 : index
    %c0_19 = arith.constant 0 : index
    %26 = vector.load %arg4[%c1_17, %c0_18, %c0_19] : memref<8x8x128xf32, #tpu.memory_space<vmem>>, vector<1x8x128xf32>
    %27 = vector.shape_cast %26 : vector<1x8x128xf32> to vector<8x128xf32>
    %c1_20 = arith.constant 1 : index
    %c0_21 = arith.constant 0 : index
    %c0_22 = arith.constant 0 : index
    %28 = vector.load %arg5[%c1_20, %c0_21, %c0_22] : memref<8x8x128xf32, #tpu.memory_space<vmem>>, vector<1x8x128xf32>
    %29 = vector.shape_cast %28 : vector<1x8x128xf32> to vector<8x128xf32>
    %30 = vector.broadcast %23 : vector<1x128xf32> to vector<8x128xf32>
    %31 = arith.mulf %30, %27 : vector<8x128xf32>
    %32 = vector.broadcast %25 : vector<1x128xf32> to vector<8x128xf32>
    %33 = arith.mulf %32, %29 : vector<8x128xf32>
    %34 = arith.subf %31, %33 : vector<8x128xf32>
    %35 = arith.addf %15, %34 : vector<8x128xf32>
    %36 = vector.broadcast %23 : vector<1x128xf32> to vector<8x128xf32>
    %37 = arith.mulf %36, %29 : vector<8x128xf32>
    %38 = vector.broadcast %25 : vector<1x128xf32> to vector<8x128xf32>
    %39 = arith.mulf %38, %27 : vector<8x128xf32>
    %40 = arith.addf %37, %39 : vector<8x128xf32>
    %41 = arith.addf %21, %40 : vector<8x128xf32>
    %c0_23 = arith.constant 0 : index
    %c2 = arith.constant 2 : index
    %c0_24 = arith.constant 0 : index
    %42 = vector.load %arg2[%c0_23, %c2, %c0_24] : memref<1x8x128xf32, #tpu.memory_space<vmem>>, vector<1x1x128xf32>
    %43 = vector.shape_cast %42 : vector<1x1x128xf32> to vector<1x128xf32>
    %c0_25 = arith.constant 0 : index
    %c2_26 = arith.constant 2 : index
    %c0_27 = arith.constant 0 : index
    %44 = vector.load %arg3[%c0_25, %c2_26, %c0_27] : memref<1x8x128xf32, #tpu.memory_space<vmem>>, vector<1x1x128xf32>
    %45 = vector.shape_cast %44 : vector<1x1x128xf32> to vector<1x128xf32>
    %c2_28 = arith.constant 2 : index
    %c0_29 = arith.constant 0 : index
    %c0_30 = arith.constant 0 : index
    %46 = vector.load %arg4[%c2_28, %c0_29, %c0_30] : memref<8x8x128xf32, #tpu.memory_space<vmem>>, vector<1x8x128xf32>
    %47 = vector.shape_cast %46 : vector<1x8x128xf32> to vector<8x128xf32>
    %c2_31 = arith.constant 2 : index
    %c0_32 = arith.constant 0 : index
    %c0_33 = arith.constant 0 : index
    %48 = vector.load %arg5[%c2_31, %c0_32, %c0_33] : memref<8x8x128xf32, #tpu.memory_space<vmem>>, vector<1x8x128xf32>
    %49 = vector.shape_cast %48 : vector<1x8x128xf32> to vector<8x128xf32>
    %50 = vector.broadcast %43 : vector<1x128xf32> to vector<8x128xf32>
    %51 = arith.mulf %50, %47 : vector<8x128xf32>
    %52 = vector.broadcast %45 : vector<1x128xf32> to vector<8x128xf32>
    %53 = arith.mulf %52, %49 : vector<8x128xf32>
    %54 = arith.subf %51, %53 : vector<8x128xf32>
    %55 = arith.addf %35, %54 : vector<8x128xf32>
    %56 = vector.broadcast %43 : vector<1x128xf32> to vector<8x128xf32>
    %57 = arith.mulf %56, %49 : vector<8x128xf32>
    %58 = vector.broadcast %45 : vector<1x128xf32> to vector<8x128xf32>
    %59 = arith.mulf %58, %47 : vector<8x128xf32>
    %60 = arith.addf %57, %59 : vector<8x128xf32>
    %61 = arith.addf %41, %60 : vector<8x128xf32>
    %c0_34 = arith.constant 0 : index
    %c3 = arith.constant 3 : index
    %c0_35 = arith.constant 0 : index
    %62 = vector.load %arg2[%c0_34, %c3, %c0_35] : memref<1x8x128xf32, #tpu.memory_space<vmem>>, vector<1x1x128xf32>
    %63 = vector.shape_cast %62 : vector<1x1x128xf32> to vector<1x128xf32>
    %c0_36 = arith.constant 0 : index
    %c3_37 = arith.constant 3 : index
    %c0_38 = arith.constant 0 : index
    %64 = vector.load %arg3[%c0_36, %c3_37, %c0_38] : memref<1x8x128xf32, #tpu.memory_space<vmem>>, vector<1x1x128xf32>
    %65 = vector.shape_cast %64 : vector<1x1x128xf32> to vector<1x128xf32>
    %c3_39 = arith.constant 3 : index
    %c0_40 = arith.constant 0 : index
    %c0_41 = arith.constant 0 : index
    %66 = vector.load %arg4[%c3_39, %c0_40, %c0_41] : memref<8x8x128xf32, #tpu.memory_space<vmem>>, vector<1x8x128xf32>
    %67 = vector.shape_cast %66 : vector<1x8x128xf32> to vector<8x128xf32>
    %c3_42 = arith.constant 3 : index
    %c0_43 = arith.constant 0 : index
    %c0_44 = arith.constant 0 : index
    %68 = vector.load %arg5[%c3_42, %c0_43, %c0_44] : memref<8x8x128xf32, #tpu.memory_space<vmem>>, vector<1x8x128xf32>
    %69 = vector.shape_cast %68 : vector<1x8x128xf32> to vector<8x128xf32>
    %70 = vector.broadcast %63 : vector<1x128xf32> to vector<8x128xf32>
    %71 = arith.mulf %70, %67 : vector<8x128xf32>
    %72 = vector.broadcast %65 : vector<1x128xf32> to vector<8x128xf32>
    %73 = arith.mulf %72, %69 : vector<8x128xf32>
    %74 = arith.subf %71, %73 : vector<8x128xf32>
    %75 = arith.addf %55, %74 : vector<8x128xf32>
    %76 = vector.broadcast %63 : vector<1x128xf32> to vector<8x128xf32>
    %77 = arith.mulf %76, %69 : vector<8x128xf32>
    %78 = vector.broadcast %65 : vector<1x128xf32> to vector<8x128xf32>
    %79 = arith.mulf %78, %67 : vector<8x128xf32>
    %80 = arith.addf %77, %79 : vector<8x128xf32>
    %81 = arith.addf %61, %80 : vector<8x128xf32>
    %c0_45 = arith.constant 0 : index
    %c4 = arith.constant 4 : index
    %c0_46 = arith.constant 0 : index
    %82 = vector.load %arg2[%c0_45, %c4, %c0_46] : memref<1x8x128xf32, #tpu.memory_space<vmem>>, vector<1x1x128xf32>
    %83 = vector.shape_cast %82 : vector<1x1x128xf32> to vector<1x128xf32>
    %c0_47 = arith.constant 0 : index
    %c4_48 = arith.constant 4 : index
    %c0_49 = arith.constant 0 : index
    %84 = vector.load %arg3[%c0_47, %c4_48, %c0_49] : memref<1x8x128xf32, #tpu.memory_space<vmem>>, vector<1x1x128xf32>
    %85 = vector.shape_cast %84 : vector<1x1x128xf32> to vector<1x128xf32>
    %c4_50 = arith.constant 4 : index
    %c0_51 = arith.constant 0 : index
    %c0_52 = arith.constant 0 : index
    %86 = vector.load %arg4[%c4_50, %c0_51, %c0_52] : memref<8x8x128xf32, #tpu.memory_space<vmem>>, vector<1x8x128xf32>
    %87 = vector.shape_cast %86 : vector<1x8x128xf32> to vector<8x128xf32>
    %c4_53 = arith.constant 4 : index
    %c0_54 = arith.constant 0 : index
    %c0_55 = arith.constant 0 : index
    %88 = vector.load %arg5[%c4_53, %c0_54, %c0_55] : memref<8x8x128xf32, #tpu.memory_space<vmem>>, vector<1x8x128xf32>
    %89 = vector.shape_cast %88 : vector<1x8x128xf32> to vector<8x128xf32>
    %90 = vector.broadcast %83 : vector<1x128xf32> to vector<8x128xf32>
    %91 = arith.mulf %90, %87 : vector<8x128xf32>
    %92 = vector.broadcast %85 : vector<1x128xf32> to vector<8x128xf32>
    %93 = arith.mulf %92, %89 : vector<8x128xf32>
    %94 = arith.subf %91, %93 : vector<8x128xf32>
    %95 = arith.addf %75, %94 : vector<8x128xf32>
    %96 = vector.broadcast %83 : vector<1x128xf32> to vector<8x128xf32>
    %97 = arith.mulf %96, %89 : vector<8x128xf32>
    %98 = vector.broadcast %85 : vector<1x128xf32> to vector<8x128xf32>
    %99 = arith.mulf %98, %87 : vector<8x128xf32>
    %100 = arith.addf %97, %99 : vector<8x128xf32>
    %101 = arith.addf %81, %100 : vector<8x128xf32>
    %c0_56 = arith.constant 0 : index
    %c5 = arith.constant 5 : index
    %c0_57 = arith.constant 0 : index
    %102 = vector.load %arg2[%c0_56, %c5, %c0_57] : memref<1x8x128xf32, #tpu.memory_space<vmem>>, vector<1x1x128xf32>
    %103 = vector.shape_cast %102 : vector<1x1x128xf32> to vector<1x128xf32>
    %c0_58 = arith.constant 0 : index
    %c5_59 = arith.constant 5 : index
    %c0_60 = arith.constant 0 : index
    %104 = vector.load %arg3[%c0_58, %c5_59, %c0_60] : memref<1x8x128xf32, #tpu.memory_space<vmem>>, vector<1x1x128xf32>
    %105 = vector.shape_cast %104 : vector<1x1x128xf32> to vector<1x128xf32>
    %c5_61 = arith.constant 5 : index
    %c0_62 = arith.constant 0 : index
    %c0_63 = arith.constant 0 : index
    %106 = vector.load %arg4[%c5_61, %c0_62, %c0_63] : memref<8x8x128xf32, #tpu.memory_space<vmem>>, vector<1x8x128xf32>
    %107 = vector.shape_cast %106 : vector<1x8x128xf32> to vector<8x128xf32>
    %c5_64 = arith.constant 5 : index
    %c0_65 = arith.constant 0 : index
    %c0_66 = arith.constant 0 : index
    %108 = vector.load %arg5[%c5_64, %c0_65, %c0_66] : memref<8x8x128xf32, #tpu.memory_space<vmem>>, vector<1x8x128xf32>
    %109 = vector.shape_cast %108 : vector<1x8x128xf32> to vector<8x128xf32>
    %110 = vector.broadcast %103 : vector<1x128xf32> to vector<8x128xf32>
    %111 = arith.mulf %110, %107 : vector<8x128xf32>
    %112 = vector.broadcast %105 : vector<1x128xf32> to vector<8x128xf32>
    %113 = arith.mulf %112, %109 : vector<8x128xf32>
    %114 = arith.subf %111, %113 : vector<8x128xf32>
    %115 = arith.addf %95, %114 : vector<8x128xf32>
    %116 = vector.broadcast %103 : vector<1x128xf32> to vector<8x128xf32>
    %117 = arith.mulf %116, %109 : vector<8x128xf32>
    %118 = vector.broadcast %105 : vector<1x128xf32> to vector<8x128xf32>
    %119 = arith.mulf %118, %107 : vector<8x128xf32>
    %120 = arith.addf %117, %119 : vector<8x128xf32>
    %121 = arith.addf %101, %120 : vector<8x128xf32>
    %c0_67 = arith.constant 0 : index
    %c6 = arith.constant 6 : index
    %c0_68 = arith.constant 0 : index
    %122 = vector.load %arg2[%c0_67, %c6, %c0_68] : memref<1x8x128xf32, #tpu.memory_space<vmem>>, vector<1x1x128xf32>
    %123 = vector.shape_cast %122 : vector<1x1x128xf32> to vector<1x128xf32>
    %c0_69 = arith.constant 0 : index
    %c6_70 = arith.constant 6 : index
    %c0_71 = arith.constant 0 : index
    %124 = vector.load %arg3[%c0_69, %c6_70, %c0_71] : memref<1x8x128xf32, #tpu.memory_space<vmem>>, vector<1x1x128xf32>
    %125 = vector.shape_cast %124 : vector<1x1x128xf32> to vector<1x128xf32>
    %c6_72 = arith.constant 6 : index
    %c0_73 = arith.constant 0 : index
    %c0_74 = arith.constant 0 : index
    %126 = vector.load %arg4[%c6_72, %c0_73, %c0_74] : memref<8x8x128xf32, #tpu.memory_space<vmem>>, vector<1x8x128xf32>
    %127 = vector.shape_cast %126 : vector<1x8x128xf32> to vector<8x128xf32>
    %c6_75 = arith.constant 6 : index
    %c0_76 = arith.constant 0 : index
    %c0_77 = arith.constant 0 : index
    %128 = vector.load %arg5[%c6_75, %c0_76, %c0_77] : memref<8x8x128xf32, #tpu.memory_space<vmem>>, vector<1x8x128xf32>
    %129 = vector.shape_cast %128 : vector<1x8x128xf32> to vector<8x128xf32>
    %130 = vector.broadcast %123 : vector<1x128xf32> to vector<8x128xf32>
    %131 = arith.mulf %130, %127 : vector<8x128xf32>
    %132 = vector.broadcast %125 : vector<1x128xf32> to vector<8x128xf32>
    %133 = arith.mulf %132, %129 : vector<8x128xf32>
    %134 = arith.subf %131, %133 : vector<8x128xf32>
    %135 = arith.addf %115, %134 : vector<8x128xf32>
    %136 = vector.broadcast %123 : vector<1x128xf32> to vector<8x128xf32>
    %137 = arith.mulf %136, %129 : vector<8x128xf32>
    %138 = vector.broadcast %125 : vector<1x128xf32> to vector<8x128xf32>
    %139 = arith.mulf %138, %127 : vector<8x128xf32>
    %140 = arith.addf %137, %139 : vector<8x128xf32>
    %141 = arith.addf %121, %140 : vector<8x128xf32>
    %c0_78 = arith.constant 0 : index
    %c7 = arith.constant 7 : index
    %c0_79 = arith.constant 0 : index
    %142 = vector.load %arg2[%c0_78, %c7, %c0_79] : memref<1x8x128xf32, #tpu.memory_space<vmem>>, vector<1x1x128xf32>
    %143 = vector.shape_cast %142 : vector<1x1x128xf32> to vector<1x128xf32>
    %c0_80 = arith.constant 0 : index
    %c7_81 = arith.constant 7 : index
    %c0_82 = arith.constant 0 : index
    %144 = vector.load %arg3[%c0_80, %c7_81, %c0_82] : memref<1x8x128xf32, #tpu.memory_space<vmem>>, vector<1x1x128xf32>
    %145 = vector.shape_cast %144 : vector<1x1x128xf32> to vector<1x128xf32>
    %c7_83 = arith.constant 7 : index
    %c0_84 = arith.constant 0 : index
    %c0_85 = arith.constant 0 : index
    %146 = vector.load %arg4[%c7_83, %c0_84, %c0_85] : memref<8x8x128xf32, #tpu.memory_space<vmem>>, vector<1x8x128xf32>
    %147 = vector.shape_cast %146 : vector<1x8x128xf32> to vector<8x128xf32>
    %c7_86 = arith.constant 7 : index
    %c0_87 = arith.constant 0 : index
    %c0_88 = arith.constant 0 : index
    %148 = vector.load %arg5[%c7_86, %c0_87, %c0_88] : memref<8x8x128xf32, #tpu.memory_space<vmem>>, vector<1x8x128xf32>
    %149 = vector.shape_cast %148 : vector<1x8x128xf32> to vector<8x128xf32>
    %150 = vector.broadcast %143 : vector<1x128xf32> to vector<8x128xf32>
    %151 = arith.mulf %150, %147 : vector<8x128xf32>
    %152 = vector.broadcast %145 : vector<1x128xf32> to vector<8x128xf32>
    %153 = arith.mulf %152, %149 : vector<8x128xf32>
    %154 = arith.subf %151, %153 : vector<8x128xf32>
    %155 = arith.addf %135, %154 : vector<8x128xf32>
    %156 = vector.broadcast %143 : vector<1x128xf32> to vector<8x128xf32>
    %157 = arith.mulf %156, %149 : vector<8x128xf32>
    %158 = vector.broadcast %145 : vector<1x128xf32> to vector<8x128xf32>
    %159 = arith.mulf %158, %147 : vector<8x128xf32>
    %160 = arith.addf %157, %159 : vector<8x128xf32>
    %161 = arith.addf %141, %160 : vector<8x128xf32>
    %c0_89 = arith.constant 0 : index
    %c0_90 = arith.constant 0 : index
    %c0_91 = arith.constant 0 : index
    %162 = vector.load %arg6[%c0_89, %c0_90, %c0_91] : memref<1x8x128xf32, #tpu.memory_space<vmem>>, vector<1x8x128xf32>
    %163 = vector.shape_cast %162 : vector<1x8x128xf32> to vector<8x128xf32>
    %164 = vector.shape_cast %155 : vector<8x128xf32> to vector<1x8x128xf32>
    tpu.vector_store %arg6[%c0_89, %c0_90, %c0_91], %164 {strides = array<i32>} : memref<1x8x128xf32, #tpu.memory_space<vmem>>, vector<1x8x128xf32>,
    %c0_92 = arith.constant 0 : index
    %c0_93 = arith.constant 0 : index
    %c0_94 = arith.constant 0 : index
    %165 = vector.load %arg7[%c0_92, %c0_93, %c0_94] : memref<1x8x128xf32, #tpu.memory_space<vmem>>, vector<1x8x128xf32>
    %166 = vector.shape_cast %165 : vector<1x8x128xf32> to vector<8x128xf32>
    %167 = vector.shape_cast %161 : vector<8x128xf32> to vector<1x8x128xf32>
    tpu.vector_store %arg7[%c0_92, %c0_93, %c0_94], %167 {strides = array<i32>} : memref<1x8x128xf32, #tpu.memory_space<vmem>>, vector<1x8x128xf32>,
    return
  }
  func.func @transform_0(%arg0: i32, %arg1: i32) -> (i32, i32, i32) {
    %c0_i32 = arith.constant 0 : i32
    %c0_i32_0 = arith.constant 0 : i32
    return %arg1, %c0_i32, %arg0 : i32, i32, i32
  }
  func.func @transform_1(%arg0: i32, %arg1: i32) -> (i32, i32, i32) {
    %c0_i32 = arith.constant 0 : i32
    %c0_i32_0 = arith.constant 0 : i32
    return %arg1, %c0_i32, %arg0 : i32, i32, i32
  }
  func.func @transform_2(%arg0: i32, %arg1: i32) -> (i32, i32, i32) {
    %c0_i32 = arith.constant 0 : i32
    %c0_i32_0 = arith.constant 0 : i32
    %c0_i32_1 = arith.constant 0 : i32
    return %c0_i32, %c0_i32_0, %arg0 : i32, i32, i32
  }
  func.func @transform_3(%arg0: i32, %arg1: i32) -> (i32, i32, i32) {
    %c0_i32 = arith.constant 0 : i32
    %c0_i32_0 = arith.constant 0 : i32
    %c0_i32_1 = arith.constant 0 : i32
    return %c0_i32, %c0_i32_0, %arg0 : i32, i32, i32
  }
  func.func @transform_4(%arg0: i32, %arg1: i32) -> (i32, i32, i32) {
    %c0_i32 = arith.constant 0 : i32
    %c0_i32_0 = arith.constant 0 : i32
    return %arg1, %c0_i32, %arg0 : i32, i32, i32
  }
  func.func @transform_5(%arg0: i32, %arg1: i32) -> (i32, i32, i32) {
    %c0_i32 = arith.constant 0 : i32
    %c0_i32_0 = arith.constant 0 : i32
    return %arg1, %c0_i32, %arg0 : i32, i32, i32
  }
}

module attributes {stable_mosaic.version = 11 : i64} {
  func.func @_conv1x1_add_gelu_kernel(%arg0: i32, %arg1: i32, %arg2: memref<1x8x256xf32, #tpu.memory_space<vmem>>, %arg3: memref<1x8x256xf32, #tpu.memory_space<vmem>>, %arg4: memref<8x8xf32, #tpu.memory_space<vmem>>, %arg5: memref<8x1xf32, #tpu.memory_space<vmem>>, %arg6: memref<1x8x256xf32, #tpu.memory_space<vmem>>) attributes {dimension_semantics = [#tpu.dimension_semantics<parallel>, #tpu.dimension_semantics<parallel>], iteration_bounds = array<i64: 2, 1>, scalar_prefetch = 0 : i64, scratch_operands = 0 : i64, tpu.core_type = #tpu.core_type<tc>, window_params = [{transform_indices = @transform_0, window_bounds = array<i64: 1, 8, 256>}, {transform_indices = @transform_1, window_bounds = array<i64: 1, 8, 256>}, {pipeline_mode = #tpu.pipeline_mode<synchronous>, transform_indices = @transform_2, window_bounds = array<i64: 8, 8>}, {pipeline_mode = #tpu.pipeline_mode<synchronous>, transform_indices = @transform_3, window_bounds = array<i64: 8, 1>}, {transform_indices = @transform_4, window_bounds = array<i64: 1, 8, 256>}]} {
    %c0 = arith.constant 0 : index
    %c0_0 = arith.constant 0 : index
    %0 = vector.load %arg4[%c0, %c0_0] : memref<8x8xf32, #tpu.memory_space<vmem>>, vector<8x8xf32>
    %c0_1 = arith.constant 0 : index
    %c0_2 = arith.constant 0 : index
    %c0_3 = arith.constant 0 : index
    %1 = vector.load %arg2[%c0_1, %c0_2, %c0_3] : memref<1x8x256xf32, #tpu.memory_space<vmem>>, vector<1x8x256xf32>
    %2 = vector.shape_cast %1 : vector<1x8x256xf32> to vector<8x256xf32>
    %cst = arith.constant dense<0.000000e+00> : vector<8x256xf32>
    %3 = tpu.matmul %0, %2, %cst {dimension_numbers = #tpu.dot_dimension_numbers<[1], [0], [0], [1], [0, 0, 1, 1], [], []>} : vector<8x8xf32>, vector<8x256xf32>, vector<8x256xf32> -> vector<8x256xf32>
    %c0_4 = arith.constant 0 : index
    %c0_5 = arith.constant 0 : index
    %4 = vector.load %arg5[%c0_4, %c0_5] : memref<8x1xf32, #tpu.memory_space<vmem>>, vector<8x1xf32>
    %5 = vector.broadcast %4 : vector<8x1xf32> to vector<8x256xf32>
    %6 = arith.addf %3, %5 : vector<8x256xf32>
    %c0_6 = arith.constant 0 : index
    %c0_7 = arith.constant 0 : index
    %c0_8 = arith.constant 0 : index
    %7 = vector.load %arg3[%c0_6, %c0_7, %c0_8] : memref<1x8x256xf32, #tpu.memory_space<vmem>>, vector<1x8x256xf32>
    %8 = vector.shape_cast %7 : vector<1x8x256xf32> to vector<8x256xf32>
    %9 = arith.addf %6, %8 : vector<8x256xf32>
    %cst_9 = arith.constant 5.000000e-01 : f32
    %10 = vector.broadcast %cst_9 : f32 to vector<8x256xf32>
    %11 = arith.mulf %10, %9 : vector<8x256xf32>
    %cst_10 = arith.constant 0.707106769 : f32
    %12 = vector.broadcast %cst_10 : f32 to vector<8x256xf32>
    %13 = arith.mulf %9, %12 : vector<8x256xf32>
    %14 = math.erf %13 : vector<8x256xf32>
    %cst_11 = arith.constant 1.000000e+00 : f32
    %15 = vector.broadcast %cst_11 : f32 to vector<8x256xf32>
    %16 = arith.addf %15, %14 : vector<8x256xf32>
    %17 = arith.mulf %11, %16 : vector<8x256xf32>
    %c0_12 = arith.constant 0 : index
    %c0_13 = arith.constant 0 : index
    %c0_14 = arith.constant 0 : index
    %18 = vector.load %arg6[%c0_12, %c0_13, %c0_14] : memref<1x8x256xf32, #tpu.memory_space<vmem>>, vector<1x8x256xf32>
    %19 = vector.shape_cast %18 : vector<1x8x256xf32> to vector<8x256xf32>
    %20 = vector.shape_cast %17 : vector<8x256xf32> to vector<1x8x256xf32>
    tpu.vector_store %arg6[%c0_12, %c0_13, %c0_14], %20 {strides = array<i32>} : memref<1x8x256xf32, #tpu.memory_space<vmem>>, vector<1x8x256xf32>,
    return
  }
  func.func @transform_0(%arg0: i32, %arg1: i32) -> (i32, i32, i32) {
    %c0_i32 = arith.constant 0 : i32
    %c0_i32_0 = arith.constant 0 : i32
    return %arg0, %c0_i32, %arg1 : i32, i32, i32
  }
  func.func @transform_1(%arg0: i32, %arg1: i32) -> (i32, i32, i32) {
    %c0_i32 = arith.constant 0 : i32
    %c0_i32_0 = arith.constant 0 : i32
    return %arg0, %c0_i32, %arg1 : i32, i32, i32
  }
  func.func @transform_2(%arg0: i32, %arg1: i32) -> (i32, i32) {
    %c0_i32 = arith.constant 0 : i32
    %c0_i32_0 = arith.constant 0 : i32
    %c0_i32_1 = arith.constant 0 : i32
    return %c0_i32, %c0_i32_0 : i32, i32
  }
  func.func @transform_3(%arg0: i32, %arg1: i32) -> (i32, i32) {
    %c0_i32 = arith.constant 0 : i32
    %c0_i32_0 = arith.constant 0 : i32
    %c0_i32_1 = arith.constant 0 : i32
    return %c0_i32, %c0_i32_0 : i32, i32
  }
  func.func @transform_4(%arg0: i32, %arg1: i32) -> (i32, i32, i32) {
    %c0_i32 = arith.constant 0 : i32
    %c0_i32_0 = arith.constant 0 : i32
    return %arg0, %c0_i32, %arg1 : i32, i32, i32
  }
}

</mosaic_0001>

<bundles_post_ra>
// kernel: reverse.13
= control target key start
LH: loop header
LB: loop body
LE: loop exit
PB: predicated region body
PF: predicated region fallthrough
CT: control target
= control target key end

     0   :  { %v103_v3 = vlaneseq  ;;  %v96_v18 = vld [vmem:[#allocation0 + $0x7] ss:$-1 sm:$0xff]  ;;  %v110_v19 = vld [vmem:[#allocation0 + $0x17] ss:$-1 sm:$0xff]  ;;  %s604_s0 = inlined_call_operand.vmem [shape: f32[2,8,16,7], index: 0, kind: input, shape index: {}]   ;;  %s605_s1 = inlined_call_operand.vmem [shape: f32[2,8,16,7], index: 1, kind: output, shape index: {}]  }
   0x1   :  { %v60_v0 = vld [vmem:[%s604_s0] sm:$0xff]  ;;  %v62_v1 = vld [vmem:[%s604_s0 + $0x8] sm:$0xff]  ;;  %v64_v2 = vld [vmem:[%s604_s0 + $0x10] sm:$0xff]  ;;  %v97_v20 = vrot.slane %v96_v18, 1  ;;  %v111_v21 = vrot.slane %v110_v19, 1 }
   0x2   :  { %61 = vst [vmem:[#allocation0 + $0x8] sm:$0xff] %v60_v0  ;;  %63 = vst [vmem:[#allocation0 + $0x18] sm:$0xff] %v62_v1  ;;  %v66_v4 = vld [vmem:[%s604_s0 + $0x18] sm:$0xff]  ;;  %v68_v5 = vld [vmem:[%s604_s0 + $0x20] sm:$0xff]  ;;  %v500_v10 = vshrl.u32 %v103_v3, 7 }
   0x3   :  { %65 = vst [vmem:[#allocation0 + $0x28] sm:$0xff] %v64_v2  ;;  %v70_v6 = vld [vmem:[%s604_s0 + $0x28] sm:$0xff]  ;;  %67 = vst [vmem:[#allocation0 + $0x38] sm:$0xff] %v66_v4  ;;  %v72_v7 = vld [vmem:[%s604_s0 + $0x30] sm:$0xff] }
   0x4   :  { %69 = vst [vmem:[#allocation0 + $0x48] sm:$0xff] %v68_v5  ;;  %71 = vst [vmem:[#allocation0 + $0x58] sm:$0xff] %v70_v6  ;;  %v74_v8 = vld [vmem:[%s604_s0 + $0x38] sm:$0xff]  ;;  %v76_v9 = vld [vmem:[%s604_s0 + $0x40] sm:$0xff]  ;;  %vm105_vm0 = vcmp.lt.s32.totalorder %v500_v10, 7 }
   0x5   :  { %73 = vst [vmem:[#allocation0 + $0x68] sm:$0xff] %v72_v7  ;;  %75 = vst [vmem:[#allocation0 + $0x78] sm:$0xff] %v74_v8  ;;  %v78_v11 = vld [vmem:[%s604_s0 + $0x48] sm:$0xff]  ;;  %v80_v12 = vld [vmem:[%s604_s0 + $0x50] sm:$0xff] }
   0x6   :  { %77 = vst [vmem:[#allocation0 + $0x88] sm:$0xff] %v76_v9  ;;  %v82_v13 = vld [vmem:[%s604_s0 + $0x58] sm:$0xff]  ;;  %79 = vst [vmem:[#allocation0 + $0x98] sm:$0xff] %v78_v11  ;;  %v84_v14 = vld [vmem:[%s604_s0 + $0x60] sm:$0xff] }
   0x7   :  { %81 = vst [vmem:[#allocation0 + $0xa8] sm:$0xff] %v80_v12  ;;  %83 = vst [vmem:[#allocation0 + $0xb8] sm:$0xff] %v82_v13  ;;  %v86_v15 = vld [vmem:[%s604_s0 + $0x68] sm:$0xff]  ;;  %v88_v16 = vld [vmem:[%s604_s0 + $0x70] sm:$0xff] }
   0x8   :  { %85 = vst [vmem:[#allocation0 + $0xc8] sm:$0xff] %v84_v14  ;;  %87 = vst [vmem:[#allocation0 + $0xd8] sm:$0xff] %v86_v15  ;;  %v90_v17 = vld [vmem:[%s604_s0 + $0x78] sm:$0xff]  ;;  %v124_v22 = vld [vmem:[#allocation0 + $0x27] ss:$-1 sm:$0xff] }
   0x9   :  { %89 = vst [vmem:[#allocation0 + $0xe8] sm:$0xff] %v88_v16  ;;  %91 = vst [vmem:[#allocation0 + $0xf8] sm:$0xff] %v90_v17  ;;  %v138_v23 = vld [vmem:[#allocation0 + $0x37] ss:$-1 sm:$0xff]  ;;  %v125_v24 = vrot.slane %v124_v22, 1 }
   0xa   :  { %v139_v25 = vrot.slane %v138_v23, 1  ;;  %v152_v26 = vld [vmem:[#allocation0 + $0x47] ss:$-1 sm:$0xff]  ;;  %v166_v27 = vld [vmem:[#allocation0 + $0x57] ss:$-1 sm:$0xff]  ;;  %98 = vst [vmem:[#allocation1] sm:$0xff] %v97_v20 }
   0xb   :  { %v101_v28 = vld [vmem:[#allocation0 + $0xf] ss:$-1 sm:$0xff]  ;;  %112 = vst [vmem:[#allocation1 + $0x8] sm:$0xff] %v111_v21  ;;  %v115_v29 = vld [vmem:[#allocation0 + $0x1f] ss:$-1 sm:$0xff]  ;;  %126 = vst [vmem:[#allocation1 + $0x10] sm:$0xff] %v125_v24 }
   0xc   :  { %v129_v30 = vld [vmem:[#allocation0 + $0x2f] ss:$-1 sm:$0xff]  ;;  %v102_v31 = vrot.slane %v101_v28, 1  ;;  %v116_v32 = vrot.slane %v115_v29, 1  ;;  %140 = vst [vmem:[#allocation1 + $0x18] sm:$0xff] %v139_v25  ;;  %v153_v35 = vrot.slane %v152_v26, 1 }
   0xd   :  { %v130_v33 = vrot.slane %v129_v30, 1  ;;  %v143_v34 = vld [vmem:[#allocation0 + $0x3f] ss:$-1 sm:$0xff]  ;;  %v157_v37 = vld [vmem:[#allocation0 + $0x4f] ss:$-1 sm:$0xff]  ;;  %v167_v38 = vrot.slane %v166_v27, 1 }
   0xe   :  { %v144_v36 = vrot.slane %v143_v34, 1  ;;  %v171_v39 = vld [vmem:[#allocation0 + $0x5f] ss:$-1 sm:$0xff]  ;;  %106 = vst.msk [vmem:[#allocation1] sm:$0xff] %vm105_vm0, %v102_v31  ;;  %120 = vst.msk [vmem:[#allocation1 + $0x8] sm:$0xff] %vm105_vm0, %v116_v32  ;;  %v158_v40 = vrot.slane %v157_v37, 1 }
   0xf   :  { %134 = vst.msk [vmem:[#allocation1 + $0x10] sm:$0xff] %vm105_vm0, %v130_v33  ;;  %154 = vst [vmem:[#allocation1 + $0x20] sm:$0xff] %v153_v35  ;;  %v172_v41 = vrot.slane %v171_v39, 1  ;;  %v180_v42 = vld [vmem:[#allocation0 + $0x67] ss:$-1 sm:$0xff] }
  0x10   :  { %v185_v43 = vld [vmem:[#allocation0 + $0x6f] ss:$-1 sm:$0xff]  ;;  %148 = vst.msk [vmem:[#allocation1 + $0x18] sm:$0xff] %vm105_vm0, %v144_v36  ;;  %168 = vst [vmem:[#allocation1 + $0x28] sm:$0xff] %v167_v38  ;;  %v181_v44 = vrot.slane %v180_v42, 1 }
  0x11   :  { %v186_v45 = vrot.slane %v185_v43, 1  ;;  %v194_v46 = vld [vmem:[#allocation0 + $0x77] ss:$-1 sm:$0xff]  ;;  %v199_v47 = vld [vmem:[#allocation0 + $0x7f] ss:$-1 sm:$0xff]  ;;  %162 = vst.msk [vmem:[#allocation1 + $0x20] sm:$0xff] %vm105_vm0, %v158_v40 }
  0x12   :  { %176 = vst.msk [vmem:[#allocation1 + $0x28] sm:$0xff] %vm105_vm0, %v172_v41  ;;  %v195_v48 = vrot.slane %v194_v46, 1  ;;  %v200_v49 = vrot.slane %v199_v47, 1  ;;  %v208_v50 = vld [vmem:[#allocation0 + $0x87] ss:$-1 sm:$0xff]  ;;  %182 = vst [vmem:[#allocation1 + $0x30] sm:$0xff] %v181_v44 }
  0x13   :  { %v213_v51 = vld [vmem:[#allocation0 + $0x8f] ss:$-1 sm:$0xff]  ;;  %v209_v52 = vrot.slane %v208_v50, 1  ;;  %v222_v54 = vld [vmem:[#allocation0 + $0x97] ss:$-1 sm:$0xff]  ;;  %190 = vst.msk [vmem:[#allocation1 + $0x30] sm:$0xff] %vm105_vm0, %v186_v45 }
  0x14   :  { %v214_v53 = vrot.slane %v213_v51, 1  ;;  %v227_v55 = vld [vmem:[#allocation0 + $0x9f] ss:$-1 sm:$0xff]  ;;  %196 = vst [vmem:[#allocation1 + $0x38] sm:$0xff] %v195_v48  ;;  %v223_v56 = vrot.slane %v222_v54, 1 }
  0x15   :  { %v228_v57 = vrot.slane %v227_v55, 1  ;;  %v236_v58 = vld [vmem:[#allocation0 + $0xa7] ss:$-1 sm:$0xff]  ;;  %v241_v59 = vld [vmem:[#allocation0 + $0xaf] ss:$-1 sm:$0xff]  ;;  %204 = vst.msk [vmem:[#allocation1 + $0x38] sm:$0xff] %vm105_vm0, %v200_v49 }
  0x16   :  { %210 = vst [vmem:[#allocation1 + $0x40] sm:$0xff] %v209_v52  ;;  %v237_v60 = vrot.slane %v236_v58, 1  ;;  %v242_v61 = vrot.slane %v241_v59, 1  ;;  %v250_v62 = vld [vmem:[#allocation0 + $0xb7] ss:$-1 sm:$0xff]  ;;  %224 = vst [vmem:[#allocation1 + $0x48] sm:$0xff] %v223_v56 }
  0x17   :  { %v255_v63 = vld [vmem:[#allocation0 + $0xbf] ss:$-1 sm:$0xff]  ;;  %218 = vst.msk [vmem:[#allocation1 + $0x40] sm:$0xff] %vm105_vm0, %v214_v53  ;;  %v251_v0 = vrot.slane %v250_v62, 1  ;;  %v264_v2 = vld [vmem:[#allocation0 + $0xc7] ss:$-1 sm:$0xff] }
  0x18   :  { %v256_v1 = vrot.slane %v255_v63, 1  ;;  %v269_v3 = vld [vmem:[#allocation0 + $0xcf] ss:$-1 sm:$0xff]  ;;  %232 = vst.msk [vmem:[#allocation1 + $0x48] sm:$0xff] %vm105_vm0, %v228_v57  ;;  %238 = vst [vmem:[#allocation1 + $0x50] sm:$0xff] %v237_v60  ;;  %v265_v4 = vrot.slane %v264_v2, 1 }
  0x19   :  { %v270_v5 = vrot.slane %v269_v3, 1  ;;  %v278_v6 = vld [vmem:[#allocation0 + $0xd7] ss:$-1 sm:$0xff]  ;;  %v283_v7 = vld [vmem:[#allocation0 + $0xdf] ss:$-1 sm:$0xff]  ;;  %246 = vst.msk [vmem:[#allocation1 + $0x50] sm:$0xff] %vm105_vm0, %v242_v61 }
  0x1a   :  { %252 = vst [vmem:[#allocation1 + $0x58] sm:$0xff] %v251_v0  ;;  %v279_v8 = vrot.slane %v278_v6, 1  ;;  %v284_v9 = vrot.slane %v283_v7, 1  ;;  %v292_v11 = vld [vmem:[#allocation0 + $0xe7] ss:$-1 sm:$0xff]  ;;  %266 = vst [vmem:[#allocation1 + $0x60] sm:$0xff] %v265_v4 }
  0x1b   :  { %v297_v12 = vld [vmem:[#allocation0 + $0xef] ss:$-1 sm:$0xff]  ;;  %260 = vst.msk [vmem:[#allocation1 + $0x58] sm:$0xff] %vm105_vm0, %v256_v1  ;;  %v293_v13 = vrot.slane %v292_v11, 1  ;;  %v306_v15 = vld [vmem:[#allocation0 + $0xf7] ss:$-1 sm:$0xff] }
  0x1c   :  { %v298_v14 = vrot.slane %v297_v12, 1  ;;  %v311_v16 = vld [vmem:[#allocation0 + $0xff] ss:$-1 sm:$0xff]  ;;  %274 = vst.msk [vmem:[#allocation1 + $0x60] sm:$0xff] %vm105_vm0, %v270_v5  ;;  %280 = vst [vmem:[#allocation1 + $0x68] sm:$0xff] %v279_v8  ;;  %v307_v17 = vrot.slane %v306_v15, 1 }
  0x1d   :  { %v312_v18 = vrot.slane %v311_v16, 1  ;;  %v374_v19 = vld [vmem:[#allocation1] sm:$0xff]  ;;  %v376_v20 = vld [vmem:[#allocation1 + $0x8] sm:$0xff]  ;;  %v378_v21 = vld [vmem:[#allocation1 + $0x10] sm:$0xff]  ;;  %288 = vst.msk [vmem:[#allocation1 + $0x68] sm:$0xff] %vm105_vm0, %v284_v9 }
  0x1e   :  { %294 = vst [vmem:[#allocation1 + $0x70] sm:$0xff] %v293_v13  ;;  %375 = vst [vmem:[%s605_s1] sm:$0xff] %v374_v19  ;;  %v380_v22 = vld [vmem:[#allocation1 + $0x18] sm:$0xff]  ;;  %v382_v23 = vld [vmem:[#allocation1 + $0x20] sm:$0xff] }
  0x1f   :  { %377 = vst [vmem:[%s605_s1 + $0x8] sm:$0xff] %v376_v20  ;;  %379 = vst [vmem:[%s605_s1 + $0x10] sm:$0xff] %v378_v21  ;;  %v384_v24 = vld [vmem:[#allocation1 + $0x28] sm:$0xff]  ;;  %v386_v25 = vld [vmem:[#allocation1 + $0x30] sm:$0xff] }
  0x20   :  { %302 = vst.msk [vmem:[#allocation1 + $0x70] sm:$0xff] %vm105_vm0, %v298_v14  ;;  %308 = vst [vmem:[#allocation1 + $0x78] sm:$0xff] %v307_v17  ;;  %v388_v26 = vld [vmem:[#allocation1 + $0x38] sm:$0xff]  ;;  %v390_v10 = vld [vmem:[#allocation1 + $0x40] sm:$0xff] }
  0x21   :  { %381 = vst [vmem:[%s605_s1 + $0x18] sm:$0xff] %v380_v22  ;;  %383 = vst [vmem:[%s605_s1 + $0x20] sm:$0xff] %v382_v23  ;;  %v392_v27 = vld [vmem:[#allocation1 + $0x48] sm:$0xff]  ;;  %v394_v28 = vld [vmem:[#allocation1 + $0x50] sm:$0xff] }
  0x22   :  { %385 = vst [vmem:[%s605_s1 + $0x28] sm:$0xff] %v384_v24  ;;  %316 = vst.msk [vmem:[#allocation1 + $0x78] sm:$0xff] %vm105_vm0, %v312_v18  ;;  %v396_v29 = vld [vmem:[#allocation1 + $0x58] sm:$0xff] }
  0x23   :  { %387 = vst [vmem:[%s605_s1 + $0x30] sm:$0xff] %v386_v25  ;;  %389 = vst [vmem:[%s605_s1 + $0x38] sm:$0xff] %v388_v26  ;;  %v398_v30 = vld [vmem:[#allocation1 + $0x60] sm:$0xff] }
  0x24   :  { %391 = vst [vmem:[%s605_s1 + $0x40] sm:$0xff] %v390_v10  ;;  %393 = vst [vmem:[%s605_s1 + $0x48] sm:$0xff] %v392_v27  ;;  %v400_v31 = vld [vmem:[#allocation1 + $0x68] sm:$0xff] }
  0x25   :  { %395 = vst [vmem:[%s605_s1 + $0x50] sm:$0xff] %v394_v28  ;;  %397 = vst [vmem:[%s605_s1 + $0x58] sm:$0xff] %v396_v29 }
  0x26   :  { %399 = vst [vmem:[%s605_s1 + $0x60] sm:$0xff] %v398_v30  ;;  %401 = vst [vmem:[%s605_s1 + $0x68] sm:$0xff] %v400_v31 }
  0x27   :  { %v402_v32 = vld [vmem:[#allocation1 + $0x70] sm:$0xff] }
  0x28   :  { %403 = vst [vmem:[%s605_s1 + $0x70] sm:$0xff] %v402_v32 }
  0x29   :  { %v404_v33 = vld [vmem:[#allocation1 + $0x78] sm:$0xff] }
  0x2a   :  { %405 = vst [vmem:[%s605_s1 + $0x78] sm:$0xff] %v404_v33 }

// kernel: stacked_basic_block.12
= control target key start
LH: loop header
LB: loop body
LE: loop exit
PB: predicated region body
PF: predicated region fallthrough
CT: control target
= control target key end

     0   :  { %s790_s18 = smov 0   ;;  %s792_s19 = smov 0   ;;  %s903_s0 = inlined_call_operand.vmem [shape: f32[2,8,128], index: 0, kind: input, shape index: {}]   ;;  %s904_s1 = inlined_call_operand.vmem [shape: f32[2,8,128], index: 1, kind: input, shape index: {}]   ;;  %s905_s2 = inlined_call_operand.vmem [shape: f32[8,8,128], index: 2, kind: input, shape index: {}]   ;;  %s906_s3 = inlined_call_operand.vmem [shape: f32[8,8,128], index: 3, kind: input, shape index: {}]   ;;  %s907_s4 = inlined_call_operand.vmem [shape: f32[2,8,128], index: 4, kind: output, shape index: {0}]   ;;  %s908_s5 = inlined_call_operand.vmem [shape: f32[2,8,128], index: 5, kind: output, shape index: {1}]  }
   0x1   :  { %s794_s20 = smov 0  }
   0x2 LB: > { %s25_s21 = sadd.s32 1, %s754_s19  ;;  %p675_p0 = scmp.ge.s32.totalorder %s758_s20, 1  ;;  %s758_s20 = sphi %s794_s20, %s16_s20   ;;  %s754_s19 = sphi %s792_s19, %s910_s19   ;;  %s750_s18 = sphi %s790_s18, %s909_s18  }
   0x3   : > { %p26_p1 = scmp.ge.s32.totalorder %s25_s21, 2  ;;  %p242_p2 = scmp.lt.s32.totalorder %s758_s20, 3 }
   0x5   : > { %s912_s21 = smov (%p26_p1, %s25_s21), 0  ;;  %p243_p3 = pnand %p675_p0, %p242_p2 }
   0x6   : > { %p296_p4 = scmp.lt.s32.totalorder (!%p243_p3), %s750_s18, 1  ;;  %v334_v0 = vld [vmem:[%s905_s2] sm:$0xff] (!%p243_p3)  ;;  %v682_v2 = vld [vmem:[%s905_s2 + $0x8] sm:$0xff] (!%p243_p3)  ;;  %v686_v4 = vld [vmem:[%s905_s2 + $0x10] sm:$0xff] (!%p243_p3) }
   0x7   : > { %246 = sbr.rel (%p243_p3) target bundleno = 43 (0x2b), region = 36  ;;  %v335_v1 = vld [vmem:[%s906_s3] sm:$0xff] (!%p243_p3)  ;;  %v683_v3 = vld [vmem:[%s906_s3 + $0x8] sm:$0xff] (!%p243_p3)  ;;  %v687_v5 = vld [vmem:[%s906_s3 + $0x10] sm:$0xff] (!%p243_p3) }
   0x8   : > { %v690_v6 = vld [vmem:[%s905_s2 + $0x18] sm:$0xff] (!%p243_p3)  ;;  %v694_v8 = vld [vmem:[%s905_s2 + $0x20] sm:$0xff] (!%p243_p3)  ;;  %v698_v13 = vld [vmem:[%s905_s2 + $0x28] sm:$0xff] (!%p243_p3) }
   0x9   : > { %v691_v7 = vld [vmem:[%s906_s3 + $0x18] sm:$0xff] (!%p243_p3)  ;;  %v695_v9 = vld [vmem:[%s906_s3 + $0x20] sm:$0xff] (!%p243_p3)  ;;  %v699_v14 = vld [vmem:[%s906_s3 + $0x28] sm:$0xff] (!%p243_p3) }
   0xa   : > { %v702_v21 = vld [vmem:[%s905_s2 + $0x30] sm:$0xff] (!%p243_p3)  ;;  %v706_v29 = vld [vmem:[%s905_s2 + $0x38] sm:$0xff] (!%p243_p3) }
   0xb   : > { %v703_v22 = vld [vmem:[%s906_s3 + $0x30] sm:$0xff] (!%p243_p3)  ;;  %v707_v30 = vld [vmem:[%s906_s3 + $0x38] sm:$0xff] (!%p243_p3) }
   0xe   : > { %s914_s18 = smov (!%p296_p4, %s750_s18), 1 }
   0xf   : > { %s820_s30 = sshll.u32 %s914_s18, 3 }
  0x10   : > { %s835_s14 = scalar_lea.vmem %s903_s0, %s820_s30  ;;  %s841_s17 = scalar_lea.vmem %s904_s1, %s820_s30 }
  0x11   : > { %v680_v10 = vld [vmem:[%s835_s14] ss:$0 sm:$0xff]  ;;  %v684_v12 = vld [vmem:[%s835_s14 + $0x1] ss:$0 sm:$0xff]  ;;  %v688_v19 = vld [vmem:[%s835_s14 + $0x2] ss:$0 sm:$0xff]  ;;  %s331_s23 = scalar_lea.vmem %s908_s5, %s820_s30 }
  0x12   : > { %v681_v11 = vld [vmem:[%s841_s17] ss:$0 sm:$0xff]  ;;  %v340_v15 = vmul.f32 %v680_v10, %v334_v0  ;;  %v685_v17 = vld [vmem:[%s841_s17 + $0x1] ss:$0 sm:$0xff]  ;;  %v362_v18 = vmul.f32 %v684_v12, %v682_v2  ;;  %v689_v20 = vld [vmem:[%s841_s17 + $0x2] ss:$0 sm:$0xff]  ;;  %v384_v24 = vmul.f32 %v688_v19, %v686_v4  ;;  %v348_v31 = vmul.f32 %v680_v10, %v335_v1 }
  0x13   : > { %v345_v16 = vmul.f32 %v681_v11, %v335_v1  ;;  %v367_v23 = vmul.f32 %v685_v17, %v683_v3  ;;  %v389_v25 = vmul.f32 %v689_v20, %v687_v5  ;;  %v692_v26 = vld [vmem:[%s835_s14 + $0x3] ss:$0 sm:$0xff]  ;;  %v696_v28 = vld [vmem:[%s835_s14 + $0x4] ss:$0 sm:$0xff]  ;;  %v700_v37 = vld [vmem:[%s835_s14 + $0x5] ss:$0 sm:$0xff]  ;;  %v349_v45 = vmul.f32 %v681_v11, %v334_v0 }
  0x14   : > { %v693_v27 = vld [vmem:[%s841_s17 + $0x3] ss:$0 sm:$0xff]  ;;  %v406_v33 = vmul.f32 %v692_v26, %v690_v6  ;;  %v697_v35 = vld [vmem:[%s841_s17 + $0x4] ss:$0 sm:$0xff]  ;;  %v428_v36 = vmul.f32 %v696_v28, %v694_v8  ;;  %v701_v38 = vld [vmem:[%s841_s17 + $0x5] ss:$0 sm:$0xff]  ;;  %v450_v46 = vmul.f32 %v700_v37, %v698_v13  ;;  %v370_v56 = vmul.f32 %v684_v12, %v683_v3 }
  0x15   : > { %v346_v32 = vsub.f32 %v340_v15, %v345_v16  ;;  %v411_v34 = vmul.f32 %v693_v27, %v691_v7  ;;  %v368_v39 = vsub.f32 %v362_v18, %v367_v23  ;;  %v390_v40 = vsub.f32 %v384_v24, %v389_v25  ;;  %v704_v42 = vld [vmem:[%s835_s14 + $0x6] ss:$0 sm:$0xff]  ;;  %v708_v44 = vld [vmem:[%s835_s14 + $0x7] ss:$0 sm:$0xff] }
  0x16   : > { %v433_v41 = vmul.f32 %v697_v35, %v695_v9  ;;  %v705_v43 = vld [vmem:[%s841_s17 + $0x6] ss:$0 sm:$0xff]  ;;  %v455_v47 = vmul.f32 %v701_v38, %v699_v14  ;;  %v709_v48 = vld [vmem:[%s841_s17 + $0x7] ss:$0 sm:$0xff]  ;;  %v472_v51 = vmul.f32 %v704_v42, %v702_v21  ;;  %v494_v54 = vmul.f32 %v708_v44, %v706_v29  ;;  %s324_s17 = scalar_lea.vmem %s907_s4, %s820_s30 }
  0x17   : > { %v369_v49 = vadd.f32 %v368_v39, %v346_v32  ;;  %v412_v50 = vsub.f32 %v406_v33, %v411_v34  ;;  %v477_v52 = vmul.f32 %v705_v43, %v703_v22  ;;  %v499_v55 = vmul.f32 %v709_v48, %v707_v30 }
  0x18   : > { %v434_v53 = vsub.f32 %v428_v36, %v433_v41  ;;  %v350_v58 = vadd.f32 %v349_v45, %v348_v31  ;;  %v371_v59 = vmul.f32 %v685_v17, %v682_v2  ;;  %v392_v60 = vmul.f32 %v688_v19, %v687_v5 }
  0x19   : > { %v391_v57 = vadd.f32 %v390_v40, %v369_v49  ;;  %v456_v61 = vsub.f32 %v450_v46, %v455_v47  ;;  %v393_v62 = vmul.f32 %v689_v20, %v686_v4  ;;  %v414_v63 = vmul.f32 %v692_v26, %v691_v7 }
  0x1a   : > { %v415_v1 = vmul.f32 %v693_v27, %v690_v6  ;;  %v372_v10 = vadd.f32 %v371_v59, %v370_v56  ;;  %v436_v11 = vmul.f32 %v696_v28, %v695_v9  ;;  %v437_v15 = vmul.f32 %v697_v35, %v694_v8 }
  0x1b   : > { %v413_v0 = vadd.f32 %v412_v50, %v391_v57  ;;  %v394_v16 = vadd.f32 %v393_v62, %v392_v60  ;;  %v458_v18 = vmul.f32 %v700_v37, %v699_v14  ;;  %v459_v23 = vmul.f32 %v701_v38, %v698_v13 }
  0x1c   : > { %v478_v25 = vsub.f32 %v472_v51, %v477_v52  ;;  %v373_v32 = vadd.f32 %v372_v10, %v350_v58  ;;  %v416_v3 = vadd.f32 %v415_v1, %v414_v63  ;;  %v500_v12 = vsub.f32 %v494_v54, %v499_v55 }
  0x1d   : > { %v435_v24 = vadd.f32 %v434_v53, %v413_v0  ;;  %v480_v31 = vmul.f32 %v704_v42, %v703_v22  ;;  %v438_v4 = vadd.f32 %v437_v15, %v436_v11  ;;  %v481_v7 = vmul.f32 %v705_v43, %v702_v21 }
  0x1e   : > { %v395_v5 = vadd.f32 %v394_v16, %v373_v32  ;;  %v460_v6 = vadd.f32 %v459_v23, %v458_v18  ;;  %v502_v9 = vmul.f32 %v708_v44, %v707_v30  ;;  %v503_v8 = vmul.f32 %v709_v48, %v706_v29 }
  0x1f   : > { %v457_v2 = vadd.f32 %v456_v61, %v435_v24  ;;  %v482_v20 = vadd.f32 %v481_v7, %v480_v31 }
  0x20   : > { %v417_v19 = vadd.f32 %v416_v3, %v395_v5  ;;  %v504_v22 = vadd.f32 %v503_v8, %v502_v9 }
  0x21   : > { %v479_v17 = vadd.f32 %v478_v25, %v457_v2 }
  0x22   : > { %v439_v14 = vadd.f32 %v438_v4, %v417_v19 }
  0x23   : > { %v501_v13 = vadd.f32 %v500_v12, %v479_v17 }
  0x24   : > { %v461_v26 = vadd.f32 %v460_v6, %v439_v14 }
  0x25   : > { %506 = vst [vmem:[%s324_s17] sm:$0xff] %v501_v13 }
  0x26   : > { %v483_v27 = vadd.f32 %v482_v20, %v461_v26 }
  0x28   : > { %v505_v21 = vadd.f32 %v504_v22, %v483_v27 }
  0x2a   : > { %507 = vst [vmem:[%s331_s23] sm:$0xff] %v505_v21 }
  0x2b PF: > { %s16_s20 = sadd.s32 1, %s758_s20   ;;  %s909_s18 = smov %s754_s19 }
  0x2c   : > { %p13_p5 = scmp.ge.s32.totalorder %s16_s20, 4   ;;  %s910_s19 = smov %s912_s21 }
  0x2e   :  { %15 = sbr.rel (!%p13_p5) target bundleno = 2 (0x2), region = 101 }

// kernel: stacked_basic_block.13
= control target key start
LH: loop header
LB: loop body
LE: loop exit
PB: predicated region body
PF: predicated region fallthrough
CT: control target
= control target key end

     0   :  { %s577_s15 = smov 0   ;;  %s579_s16 = smov 0   ;;  %s619_s0 = inlined_call_operand.vmem [shape: f32[2,8,256], index: 0, kind: input, shape index: {}]   ;;  %s620_s1 = inlined_call_operand.vmem [shape: f32[2,8,256], index: 1, kind: input, shape index: {}]   ;;  %s621_s2 = inlined_call_operand.vmem [shape: f32[8,8], index: 2, kind: input, shape index: {}]   ;;  %s622_s3 = inlined_call_operand.vmem [shape: f32[8,1], index: 3, kind: input, shape index: {}]   ;;  %s623_s4 = inlined_call_operand.vmem [shape: f32[2,8,256], index: 4, kind: output, shape index: {}]  }
   0x1   :  { %s581_s17 = smov 0  }
   0x2 LB: > { %s26_s18 = sadd.s32 1, %s544_s16  ;;  %p482_p0 = scmp.ge.s32.totalorder %s548_s17, 1  ;;  %s548_s17 = sphi %s581_s17, %s14_s17   ;;  %s544_s16 = sphi %s579_s16, %s625_s16   ;;  %s540_s15 = sphi %s577_s15, %s624_s15  }
   0x3   : > { %p28_p1 = scmp.ge.s32.totalorder %s26_s18, 2  ;;  %p200_p2 = scmp.lt.s32.totalorder %s548_s17, 3 }
   0x5   : > { %s627_s18 = smov (%p28_p1, %s26_s18), 0  ;;  %p201_p3 = pnand %p482_p0, %p200_p2 }
   0x6   : > { %p244_p4 = scmp.lt.s32.totalorder (!%p201_p3), %s540_s15, 1  ;;  %v276_v0 = vld [vmem:[%s622_s3] sm:$0xff] (!%p201_p3)  ;;  %v550_v1 = vmov (!%p201_p3), 0.0   ;;  %v551_v2 = vmov (!%p201_p3), 0   ;;  %vm282_vm0 = vcmask (!%p201_p3), 64512  }
   0x7   : > { %204 = sbr.rel (%p201_p3) target bundleno = 255 (0xff), region = 36  ;;  %350 = vmatprep.mubr.f32.mxu0 (!%p201_p3), %v550_v1  ;;  %521 = vset.pattern.permute.xlu0 (!%p201_p3), %v551_v2  ;;  %v273_v5 = vld [vmem:[%s621_s2] sm:$0xff] (!%p201_p3) }
   0x8   : > { %279 = vperm.xlu0 (!%p201_p3), %521, %v276_v0  }
   0xe   : > { %s629_s15 = smov (!%p244_p4, %s540_s15), 1 }
   0xf   : > { %s492_s21 = sshll.u32 %s629_s15, 4 }
  0x10   : > { %s251_s24 = scalar_lea.vmem %s619_s0, %s492_s21  ;;  %s261_s29 = scalar_lea.vmem %s620_s1, %s492_s21 }
  0x11   : > { %v275_v3 = vld [vmem:[%s251_s24 + $0x8] sm:$0xff]  ;;  %v274_v4 = vld [vmem:[%s251_s24] sm:$0xff]  ;;  %s271_s6 = scalar_lea.vmem %s623_s4, %s492_s21 }
  0x12   : > { %286 = vmatprep.subr.mxu0 %v275_v3  ;;  %v357_v8 = vld [vmem:[%s261_s29] sm:$0xff]  ;;  %v358_v11 = vld [vmem:[%s261_s29 + $0x8] sm:$0xff] }
  0x13   : > { %287 = vmatpush1.msra.mxu0 %v274_v4 }
  0x14   : > { %489 = vmatmul.mubr.msk.f32.vlgmr.msra.gmra.mrb[0].mxu0 %vm282_vm0, %v273_v5 }
  0x87   : > { %v280_v6 = vpop.permute.xlu0 %279 }
  0xe7   : > { %v352_v7 = vpop.f32.mrb[0].mxu0 }
  0xe8   : > { %v353_v9 = vadd.f32 %v352_v7, %v280_v6  ;;  %v354_v10 = vpop.f32.mrb[1].mxu0 }
  0xe9   : > { %v355_v12 = vadd.f32 %v354_v10, %v280_v6 }
  0xea   : > { %v359_v13 = vadd.f32 %v357_v8, %v353_v9 }
  0xeb   : > { %v360_v14 = vadd.f32 %v358_v11, %v355_v12 }
  0xec   : > { %v363_v15 = vmul.f32 0.70710677, %v359_v13  ;;  %v361_v19 = vmul.f32 0.5, %v359_v13 }
  0xed   : > { %v364_v16 = vmul.f32 0.70710677, %v360_v14  ;;  %v362_v21 = vmul.f32 0.5, %v360_v14 }
  0xee   : > { %522 = verf.f32 %v363_v15 }
  0xef   : > { %524 = verf.f32 %v364_v16 }
  0xf8   : > { %v523_v17 = vpop.eup %522 }
  0xf9   : > { %v525_v18 = vpop.eup %524  ;;  %v367_v20 = vadd.f32 1.0, %v523_v17 }
  0xfa   : > { %v368_v22 = vadd.f32 1.0, %v525_v18 }
  0xfb   : > { %v369_v23 = vmul.f32 %v367_v20, %v361_v19 }
  0xfc   : > { %v370_v24 = vmul.f32 %v368_v22, %v362_v21 }
  0xfd   : > { %371 = vst [vmem:[%s271_s6] sm:$0xff] %v369_v23 }
  0xfe   : > { %372 = vst [vmem:[%s271_s6 + $0x8] sm:$0xff] %v370_v24 }
  0xff PF: > { %s14_s17 = sadd.s32 1, %s548_s17   ;;  %s624_s15 = smov %s544_s16 }
 0x100   : > { %p11_p5 = scmp.ge.s32.totalorder %s14_s17, 4   ;;  %s625_s16 = smov %s627_s18 }
 0x102   :  { %13 = sbr.rel (!%p11_p5) target bundleno = 2 (0x2), region = 69 }

</bundles_post_ra>
